<compile_context>
chip_gen: v7x
topology: tpu7x:2x2x1
jax: 0.10.0
libtpu: 0.0.40
codegen_flags: <defaults>
</compile_context>

<pallas_src>
import functools
import math

import jax
import jax.numpy as jnp
from jax import lax
from jax.experimental import pallas as pl
from jax.experimental.pallas import tpu as pltpu

LN_EPS = 1e-5
_VMEM_LIMIT = 48 * 1024 * 1024   # < v7x 64 MiB physical; > v5e/v6e scoped defaults


def _round_up(n, m):
    return ((n + m - 1) // m) * m


# ----------------------------- Pallas kernels -----------------------------

def _layernorm_kernel(x_ref, g_ref, b_ref, o_ref, *, eps):
    """LayerNorm over the last (lane) dim for a (TM, D) row tile."""
    x = x_ref[...].astype(jnp.float32)                       # (TM, D)
    mean = jnp.mean(x, axis=-1, keepdims=True)                # XLU reduce
    xc = x - mean
    var = jnp.mean(xc * xc, axis=-1, keepdims=True)
    inv = lax.rsqrt(var + eps)                                # EUP
    y = xc * inv * g_ref[...].astype(jnp.float32) + b_ref[...].astype(jnp.float32)
    o_ref[...] = y.astype(o_ref.dtype)


def _prenorm_linear_kernel(x_ref, g_ref, b_ref, w_ref, wb_ref, o_ref, xn_ref, *, eps):
    """Fused LayerNorm -> Linear for a (TM, D) row tile x (D, TN) weight tile.

    Grid = (row_tiles, col_tiles). The normalized tile is computed once per row tile
    (j == 0) in f32 and stored in VMEM scratch in the matmul dtype (W's storage dtype,
    e.g. bf16), then reused for every column tile. MXU accumulates in f32.
    """
    j = pl.program_id(1)

    @pl.when(j == 0)
    def _():
        x = x_ref[...].astype(jnp.float32)                    # (TM, D)
        mean = jnp.mean(x, axis=-1, keepdims=True)
        xc = x - mean
        var = jnp.mean(xc * xc, axis=-1, keepdims=True)
        inv = lax.rsqrt(var + eps)                            # EUP
        xn = xc * inv * g_ref[...].astype(jnp.float32) + b_ref[...].astype(jnp.float32)
        xn_ref[...] = xn.astype(xn_ref.dtype)                 # cast down to matmul dtype

    y = jnp.dot(xn_ref[...], w_ref[...],                      # MXU in storage dtype
                preferred_element_type=jnp.float32)           # f32 accumulation
    o_ref[...] = (y + wb_ref[...].astype(jnp.float32)).astype(o_ref.dtype)


# ----------------------------- tiling heuristics -----------------------------

def _choose_row_tile(rows, per_row_bytes, *, sublane, budget):
    """Largest row tile (multiple of `sublane`, <=512) whose VMEM tiles fit `budget`."""
    tm = 512
    while tm > sublane and tm * per_row_bytes > budget:
        tm //= 2
    tm = max(tm, sublane)
    tm = min(tm, _round_up(rows, sublane))   # don't over-allocate for tiny inputs
    return tm


def _choose_col_tile(d, d_out, w_itemsize, budget=8 << 20):
    """Output-column tile: multiple of 256/128, double-buffered W tile under `budget`."""
    if d_out <= 512:
        return d_out                          # small enough: full extent (legal block)
    for tn in (1024, 512, 256, 128):
        if d_out % tn == 0 and 2 * d * tn * w_itemsize <= budget:
            return tn
    # TODO(synk): pad ragged d_out to a multiple of 128 instead of one full-width W block.
    return d_out


# ----------------------------- kernel wrappers -----------------------------

def layer_norm(x, gamma, beta, *, eps=LN_EPS):
    """Pallas LayerNorm over the last dim; works on any leading shape."""
    orig_shape = x.shape
    d = orig_shape[-1]
    rows = math.prod(orig_shape[:-1])
    xf = x.reshape(rows, d)

    itemsize = jnp.dtype(x.dtype).itemsize
    sublane = 16 if itemsize <= 2 else 8      # bf16 min sublane tile is (16, 128)
    per_row = 4 * d * itemsize                # double-buffered input + output tiles
    tm = _choose_row_tile(rows, per_row, sublane=sublane, budget=12 << 20)

    rows_p = _round_up(rows, tm)
    if rows_p != rows:
        xf = jnp.pad(xf, ((0, rows_p - rows), (0, 0)))

    out = pl.pallas_call(
        functools.partial(_layernorm_kernel, eps=eps),
        out_shape=jax.ShapeDtypeStruct((rows_p, d), x.dtype),
        grid_spec=pltpu.PrefetchScalarGridSpec(
            num_scalar_prefetch=0,
            grid=(rows_p // tm,),
            in_specs=[
                pl.BlockSpec((tm, d), lambda i: (i, 0)),      # x row tile
                pl.BlockSpec((1, d), lambda i: (0, 0)),       # gamma
                pl.BlockSpec((1, d), lambda i: (0, 0)),       # beta
            ],
            out_specs=pl.BlockSpec((tm, d), lambda i: (i, 0)),
        ),
        compiler_params=pltpu.CompilerParams(
            dimension_semantics=("parallel",),
            vmem_limit_bytes=_VMEM_LIMIT),
    )(xf, gamma.reshape(1, d), beta.reshape(1, d))

    if rows_p != rows:
        out = out[:rows]
    return out.reshape(orig_shape)


def pre_norm(params, x, fn, **kwargs):
    """General PreNorm: fn(LayerNorm(x), **kwargs) — fn is any JAX callable.

    Prefer `pre_norm_linear` whenever fn starts with a Linear projection (fused, no HBM
    round trip for the normalized activations)."""
    return fn(layer_norm(x, params["gamma"], params["beta"]), **kwargs)


def pre_norm_linear(x, gamma, beta, w, b, *, eps=LN_EPS):
    """Fused fast path for PreNorm(dim, Linear(dim, d_out)) in one Pallas kernel."""
    orig_shape = x.shape
    d = orig_shape[-1]
    d_out = w.shape[-1]
    rows = math.prod(orig_shape[:-1])
    xf = x.reshape(rows, d)

    x_b = jnp.dtype(x.dtype).itemsize
    w_b = jnp.dtype(w.dtype).itemsize
    sublane = 16 if x_b <= 2 else 8

    tn = _choose_col_tile(d, d_out, w_b)
    # per-row VMEM: double-buffered x + out tiles plus the cached normalized row (scratch)
    per_row = 2 * d * x_b + 2 * tn * x_b + d * w_b
    row_budget = max((24 << 20) - 2 * d * tn * w_b, 4 << 20)
    tm = _choose_row_tile(rows, per_row, sublane=sublane, budget=row_budget)

    rows_p = _round_up(rows, tm)
    if rows_p != rows:
        xf = jnp.pad(xf, ((0, rows_p - rows), (0, 0)))

    out = pl.pallas_call(
        functools.partial(_prenorm_linear_kernel, eps=eps),
        out_shape=jax.ShapeDtypeStruct((rows_p, d_out), x.dtype),
        grid_spec=pltpu.PrefetchScalarGridSpec(
            num_scalar_prefetch=0,
            grid=(rows_p // tm, d_out // tn),
            in_specs=[
                pl.BlockSpec((tm, d), lambda i, j: (i, 0)),    # x row tile
                pl.BlockSpec((1, d), lambda i, j: (0, 0)),     # gamma
                pl.BlockSpec((1, d), lambda i, j: (0, 0)),     # beta
                pl.BlockSpec((d, tn), lambda i, j: (0, j)),    # W column tile (pipelined)
                pl.BlockSpec((1, tn), lambda i, j: (0, j)),    # linear bias tile
            ],
            out_specs=pl.BlockSpec((tm, tn), lambda i, j: (i, j)),
            scratch_shapes=[pltpu.VMEM((tm, d), w.dtype)],     # cached normalized tile
        ),
        compiler_params=pltpu.CompilerParams(
            dimension_semantics=("parallel", "arbitrary"),
            vmem_limit_bytes=_VMEM_LIMIT),
    )(xf, gamma.reshape(1, d), beta.reshape(1, d), w, b.reshape(1, d_out))

    if rows_p != rows:
        out = out[:rows]
    return out.reshape(orig_shape[:-1] + (d_out,))


# ----------------------------- demo / self-test -----------------------------

if __name__ == "__main__":
    key = jax.random.PRNGKey(0)
    B, S, D = 2, 8, 32                       # batch=2, seq=8, hidden(dim)=32
    k1, k2, k3, k4, k5, k6 = jax.random.split(key, 6)
    x = jax.random.normal(k1, (B, S, D), jnp.float32)
    gamma = 1.0 + 0.1 * jax.random.normal(k2, (D,), jnp.float32)
    beta = 0.1 * jax.random.normal(k3, (D,), jnp.float32)
    # Representative fn: Linear(dim, dim) (the usual Transformer PreNorm wrapping).
    w = jax.random.normal(k4, (D, D), jnp.float32) / math.sqrt(D)
    lin_b = 0.1 * jax.random.normal(k5, (D,), jnp.float32)

    # Pure-JAX reference (matches torch.nn.LayerNorm eval semantics, eps=1e-5).
    def ref_layer_norm(z):
        mean = z.mean(-1, keepdims=True)
        var = ((z - mean) ** 2).mean(-1, keepdims=True)
        return (z - mean) / jnp.sqrt(var + LN_EPS) * gamma + beta

    fn = lambda z: z @ w + lin_b
    ref = fn(ref_layer_norm(x))
    params = {"gamma": gamma, "beta": beta}

    # 1) General path: Pallas LayerNorm kernel + arbitrary fn.
    out_general = jax.jit(lambda xx: pre_norm(params, xx, fn))(x)
    # 2) Fused path: LayerNorm + Linear in a single Pallas kernel.
    out_fused = jax.jit(pre_norm_linear)(x, gamma, beta, w, lin_b)
    # 3) Ragged row count (exercises the pad-to-tile / sliced-output path).
    x2 = jax.random.normal(k6, (3, 5, D), jnp.float32)
    ref2 = fn(ref_layer_norm(x2))
    out_ragged = jax.jit(pre_norm_linear)(x2, gamma, beta, w, lin_b)
    # 4) bf16 storage: the fused matmul runs in bf16 on the MXU with f32 accumulation.
    out_bf16 = jax.jit(pre_norm_linear)(
        x.astype(jnp.bfloat16), gamma.astype(jnp.bfloat16), beta.astype(jnp.bfloat16),
        w.astype(jnp.bfloat16), lin_b.astype(jnp.bfloat16))

    jax.block_until_ready((out_general, out_fused, out_ragged, out_bf16))

    assert out_general.shape == (B, S, D) and out_fused.shape == (B, S, D)
    assert out_ragged.shape == (3, 5, D) and out_bf16.shape == (B, S, D)
    assert jnp.all(jnp.isfinite(out_general)) and jnp.all(jnp.isfinite(out_fused))
    assert jnp.all(jnp.isfinite(out_ragged))
    assert jnp.all(jnp.isfinite(out_bf16.astype(jnp.float32)))
    assert jnp.allclose(out_general, ref, atol=5e-4, rtol=5e-4)
    assert jnp.allclose(out_fused, ref, atol=5e-4, rtol=5e-4)
    assert jnp.allclose(out_ragged, ref2, atol=5e-4, rtol=5e-4)
    assert jnp.allclose(out_bf16.astype(jnp.float32), ref, atol=1e-1, rtol=1e-1)
    print("KERNEL_OK")
</pallas_src>

<mosaic_0001>
module attributes {stable_mosaic.version = 11 : i64} {
  func.func @_layernorm_kernel(%arg0: i32, %arg1: memref<16x32xf32, #tpu.memory_space<vmem>>, %arg2: memref<1x32xf32, #tpu.memory_space<vmem>>, %arg3: memref<1x32xf32, #tpu.memory_space<vmem>>, %arg4: memref<16x32xf32, #tpu.memory_space<vmem>>) attributes {dimension_semantics = [#tpu.dimension_semantics<parallel>], iteration_bounds = array<i64: 1>, scalar_prefetch = 0 : i64, scratch_operands = 0 : i64, tpu.core_type = #tpu.core_type<tc>, window_params = [{transform_indices = @transform_0, window_bounds = array<i64: 16, 32>}, {pipeline_mode = #tpu.pipeline_mode<synchronous>, transform_indices = @transform_1, window_bounds = array<i64: 1, 32>}, {pipeline_mode = #tpu.pipeline_mode<synchronous>, transform_indices = @transform_2, window_bounds = array<i64: 1, 32>}, {transform_indices = @transform_3, window_bounds = array<i64: 16, 32>}]} {
    %c0 = arith.constant 0 : index
    %c0_0 = arith.constant 0 : index
    %0 = vector.load %arg1[%c0, %c0_0] : memref<16x32xf32, #tpu.memory_space<vmem>>, vector<16x32xf32>
    %cst = arith.constant dense<0.000000e+00> : vector<16xf32>
    %1 = vector.multi_reduction <add>, %0, %cst [1] : vector<16x32xf32> to vector<16xf32>
    %2 = vector.shape_cast %1 : vector<16xf32> to vector<16x1xf32>
    %cst_1 = arith.constant 3.200000e+01 : f32
    %3 = vector.broadcast %cst_1 : f32 to vector<16x1xf32>
    %4 = arith.divf %2, %3 : vector<16x1xf32>
    %5 = vector.broadcast %4 : vector<16x1xf32> to vector<16x32xf32>
    %6 = arith.subf %0, %5 : vector<16x32xf32>
    %7 = arith.mulf %6, %6 : vector<16x32xf32>
    %cst_2 = arith.constant dense<0.000000e+00> : vector<16xf32>
    %8 = vector.multi_reduction <add>, %7, %cst_2 [1] : vector<16x32xf32> to vector<16xf32>
    %9 = vector.shape_cast %8 : vector<16xf32> to vector<16x1xf32>
    %cst_3 = arith.constant 3.200000e+01 : f32
    %10 = vector.broadcast %cst_3 : f32 to vector<16x1xf32>
    %11 = arith.divf %9, %10 : vector<16x1xf32>
    %cst_4 = arith.constant 9.99999974E-6 : f32
    %12 = vector.broadcast %cst_4 : f32 to vector<16x1xf32>
    %13 = arith.addf %11, %12 : vector<16x1xf32>
    %14 = math.rsqrt %13 : vector<16x1xf32>
    %15 = vector.broadcast %14 : vector<16x1xf32> to vector<16x32xf32>
    %16 = arith.mulf %6, %15 : vector<16x32xf32>
    %c0_5 = arith.constant 0 : index
    %c0_6 = arith.constant 0 : index
    %17 = vector.load %arg2[%c0_5, %c0_6] : memref<1x32xf32, #tpu.memory_space<vmem>>, vector<1x32xf32>
    %18 = vector.broadcast %17 : vector<1x32xf32> to vector<16x32xf32>
    %19 = arith.mulf %16, %18 : vector<16x32xf32>
    %c0_7 = arith.constant 0 : index
    %c0_8 = arith.constant 0 : index
    %20 = vector.load %arg3[%c0_7, %c0_8] : memref<1x32xf32, #tpu.memory_space<vmem>>, vector<1x32xf32>
    %21 = vector.broadcast %20 : vector<1x32xf32> to vector<16x32xf32>
    %22 = arith.addf %19, %21 : vector<16x32xf32>
    %c0_9 = arith.constant 0 : index
    %c0_10 = arith.constant 0 : index
    %23 = vector.load %arg4[%c0_9, %c0_10] : memref<16x32xf32, #tpu.memory_space<vmem>>, vector<16x32xf32>
    tpu.vector_store %arg4[%c0_9, %c0_10], %22 {strides = array<i32>} : memref<16x32xf32, #tpu.memory_space<vmem>>, vector<16x32xf32>,
    return
  }
  func.func @transform_0(%arg0: i32) -> (i32, i32) {
    %c0_i32 = arith.constant 0 : i32
    %c0_i32_0 = arith.constant 0 : i32
    return %arg0, %c0_i32 : i32, i32
  }
  func.func @transform_1(%arg0: i32) -> (i32, i32) {
    %c0_i32 = arith.constant 0 : i32
    %c0_i32_0 = arith.constant 0 : i32
    %c0_i32_1 = arith.constant 0 : i32
    return %c0_i32, %c0_i32_0 : i32, i32
  }
  func.func @transform_2(%arg0: i32) -> (i32, i32) {
    %c0_i32 = arith.constant 0 : i32
    %c0_i32_0 = arith.constant 0 : i32
    %c0_i32_1 = arith.constant 0 : i32
    return %c0_i32, %c0_i32_0 : i32, i32
  }
  func.func @transform_3(%arg0: i32) -> (i32, i32) {
    %c0_i32 = arith.constant 0 : i32
    %c0_i32_0 = arith.constant 0 : i32
    return %arg0, %c0_i32 : i32, i32
  }
}

</mosaic_0001>

<bundles_post_ra>
// kernel: _lambda_.1
= control target key start
LH: loop header
LB: loop body
LE: loop exit
PB: predicated region body
PF: predicated region fallthrough
CT: control target
= control target key end

     0   :  { %8 = vsyncpa [#allocation3], 0  ;;  %s116_s12 = smov [#allocation2]   ;;  %s169_s0 = inlined_call_operand.hbm [shape: f32[16,32], index: 0, kind: input, shape index: {}]   ;;  %s170_s1 = inlined_call_operand.vmem [shape: f32[1,32], index: 1, kind: input, shape index: {}]   ;;  %s171_s2 = inlined_call_operand.vmem [shape: f32[1,32], index: 2, kind: input, shape index: {}]   ;;  %s172_s3 = inlined_call_operand.vmem [shape: f32[16,32], index: 3, kind: output, shape index: {}]  }
   0x1   :  { %s14_s13 = sshll.u32 %s116_s12, 4  ;;  %s92_s16 = scalar_lea.hbm %s169_s0, 256  ;;  %s15_s13 = int_to_ptr.vmem [resolvable:$true] %s14_s13 }
   0x2   :  { %p93_p0 = scmp.ne.s32.totalorder %s169_s0, %s92_s16  ;;  %p96_p1 = scmp.lt.u32.totalorder %s92_s16, %s169_s0 }
   0x4   :  { %p98_p2 = pnand %p96_p1, %p93_p0 }
   0x6   :  { %101 = shalt.err (!%p98_p2)
}
   0x7   :  { %s102_s21 = scalar_lea.vmem %s15_s13, 256  ;;  %p107_p4 = scmp.lt.s32.totalorder %s15_s13, %s15_s13 }
   0x8   :  { %p103_p3 = scmp.ne.s32.totalorder %s15_s13, %s102_s21  ;;  %p108_p5 = scmp.lt.s32.totalorder %s102_s21, %s102_s21 }
   0xa   :  { %p109_p6 = por %p108_p5, %p107_p4 }
   0xc   :  { %p110_p7 = pnand %p109_p6, %p103_p3 }
   0xe   :  { %113 = shalt.err (!%p110_p7)
}
   0xf   :  { %s117_s22 = smov 128   ;;  %s118_s23 = smov 8  }
  0x10   :  { %20 = dma.hbm_to_vmem [thread:$0]  %s169_s0, 256, %s15_s13, [#allocation3], %s117_s22, %s117_s22, %s118_s23  }
  0x11   :  { %114 = dma.done.wait [#allocation3], 256  }
  0x12   :  { %115 = vsyncadd [#allocation3], 4294967040  ;;  %vm30_vm0 = vcmask 261120   ;;  %v28_v0 = vld [vmem:[#allocation2] sm:$0xff]  ;;  %v29_v1 = vld [vmem:[#allocation2 + $0x8] sm:$0xff] }
  0x13   :  { %v31_v2 = vsel %vm30_vm0, %v28_v0, 0.0  ;;  %v34_v3 = vsel %vm30_vm0, %v29_v1, 0.0  ;;  %v83_v21 = vld [vmem:[%s170_s1] ss:$0 sm:$0xff] }
  0x14   :  { %32 = vadd.xlane.f32.xlu0 %v31_v2  ;;  %v84_v23 = vld [vmem:[%s171_s2] ss:$0 sm:$0xff] }
  0x18   :  { %35 = vadd.xlane.f32.xlu0 %v34_v3 }
  0xa1   :  { %v33_v4 = vpop.xlane.xlu0 %32 }
  0xa2   :  { %v38_v5 = vmul.f32 0.03125, %v33_v4 }
  0xa4   :  { %v40_v6 = vsub.f32 %v28_v0, %v38_v5 }
  0xa5   :  { %v36_v7 = vpop.xlane.xlu0 %35 }
  0xa6   :  { %v39_v8 = vmul.f32 0.03125, %v36_v7  ;;  %v42_v9 = vmul.f32 %v40_v6, %v40_v6 }
  0xa8   :  { %v41_v10 = vsub.f32 %v29_v1, %v39_v8  ;;  %v44_v11 = vsel %vm30_vm0, %v42_v9, 0.0 }
  0xa9   :  { %45 = vadd.xlane.f32.xlu1 %v44_v11 }
  0xaa   :  { %v43_v12 = vmul.f32 %v41_v10, %v41_v10 }
  0xac   :  { %v47_v13 = vsel %vm30_vm0, %v43_v12, 0.0 }
  0xad   :  { %48 = vadd.xlane.f32.xlu1 %v47_v13 }
 0x136   :  { %v46_v14 = vpop.xlane.xlu1 %45 }
 0x137   :  { %v50_v15 = vmul.f32 0.03125, %v46_v14 }
 0x139   :  { %v52_v16 = vadd.f32 1e-05, %v50_v15 }
 0x13a   :  { %v49_v17 = vpop.xlane.xlu1 %48 }
 0x13b   :  { %88 = vrsqrt.f32 %v52_v16  ;;  %v51_v18 = vmul.f32 0.03125, %v49_v17 }
 0x13d   :  { %v53_v19 = vadd.f32 1e-05, %v51_v18 }
 0x13f   :  { %90 = vrsqrt.f32 %v53_v19 }
 0x145   :  { %v89_v20 = vpop.eup %88 }
 0x146   :  { %v56_v22 = vmul.f32 %v89_v20, %v40_v6 }
 0x148   :  { %v65_v24 = vmul.f32 %v83_v21, %v56_v22 }
 0x149   :  { %v91_v25 = vpop.eup %90 }
 0x14a   :  { %v74_v26 = vadd.f32 %v84_v23, %v65_v24  ;;  %v57_v27 = vmul.f32 %v91_v25, %v41_v10 }
 0x14c   :  { %76 = vst.msk [vmem:[%s172_s3] sm:$0xff] %vm30_vm0, %v74_v26  ;;  %v66_v28 = vmul.f32 %v83_v21, %v57_v27 }
 0x14e   :  { %v75_v29 = vadd.f32 %v84_v23, %v66_v28 }
 0x150   :  { %77 = vst.msk [vmem:[%s172_s3 + $0x8] sm:$0xff] %vm30_vm0, %v75_v29 }
 0x151   :  { %82 = vsyncpa [#allocation3], 1 }

</bundles_post_ra>
